<compile_context>
chip_gen: v7x
topology: tpu7x:2x2x1
jax: 0.10.0
libtpu: 0.0.40
codegen_flags: <defaults>
</compile_context>

<pallas_src>
import functools

import jax
import jax.numpy as jnp
from jax.experimental import pallas as pl
from jax.experimental.pallas import tpu as pltpu


def _round_up(x, m):
    return ((x + m - 1) // m) * m


_SQRT_HALF = 0.7071067811865476


def _gelu(x, approximate):
    if approximate:
        # tanh GELU: the tanh lowers to the EUP (separate VLIW slot), so it
        # hides behind the matmuls instead of saturating the VALU.
        return jax.nn.gelu(x, approximate=True)
    # Exact erf-based GELU: matches PyTorch nn.GELU() default (VALU-heavy).
    return 0.5 * x * (1.0 + jax.lax.erf(x * _SQRT_HALF))


def _dynamics_kernel(z_ref, w1_ref, b1_ref, w2_ref, b2_ref, w3_ref, b3_ref,
                     o_ref, *, m_chunk, approximate_gelu):
    cdt = w1_ref.dtype  # MXU input dtype (bf16 fast path / f32 exact path)

    # Small resident weights/biases: load once per grid step.
    w1 = w1_ref[...]
    w2 = w2_ref[...]
    w3 = w3_ref[...]
    b1 = b1_ref[...].astype(jnp.float32)
    b2 = b2_ref[...].astype(jnp.float32)
    b3 = b3_ref[...].astype(jnp.float32)

    def chunk(c, carry):
        r = pl.multiple_of(c * m_chunk, m_chunk)
        z = z_ref[pl.ds(r, m_chunk), :].astype(cdt)
        h = jnp.dot(z, w1, preferred_element_type=jnp.float32)
        h = _gelu(h + b1, approximate_gelu)
        h = jnp.dot(h.astype(cdt), w2, preferred_element_type=jnp.float32)
        h = _gelu(h + b2, approximate_gelu)
        o = jnp.dot(h.astype(cdt), w3, preferred_element_type=jnp.float32) + b3
        o_ref[pl.ds(r, m_chunk), :] = o.astype(o_ref.dtype)
        return carry

    n_chunks = z_ref.shape[0] // m_chunk
    if n_chunks == 1:
        chunk(0, 0)
    else:
        # Unrolled so the LLO scheduler can co-issue chunk i's GELU (VPU/EUP)
        # with chunk i+1's matmuls (MXU).
        jax.lax.fori_loop(0, n_chunks, chunk, 0, unroll=True)


def prepare_params(params, weight_dtype=jnp.bfloat16):
    """One-time parameter prep, done before the ODE solve.

    Casting weights here (instead of per-call) means each dynamics evaluation
    launches only the fused pallas_call. Biases stay f32 — they are added to
    the f32 MXU accumulator inside the kernel.
    """
    w1, b1, w2, b2, w3, b3 = params
    if weight_dtype is not None:
        w1, w2, w3 = (w.astype(weight_dtype) for w in (w1, w2, w3))
    b1, b2, b3 = (b.astype(jnp.float32) for b in (b1, b2, b3))
    return w1, b1, w2, b2, w3, b3


def dynamics_forward(t, z, params, *, block_b=None, approximate_gelu=True):
    """Fused MLP forward. `t` is unused (matches the reference module)."""
    del t
    w1, b1, w2, b2, w3, b3 = params
    B, latent_dim = z.shape
    h1 = w1.shape[1]
    h2 = w2.shape[1]
    out_dim = w3.shape[1]

    # Batch tiling: >= 2 grid steps once B > 128 so v7x's two TensorCores both
    # get work ("parallel" axis); cap at 1024 to amortize per-step overhead.
    if block_b is None:
        if B <= 128:
            block_b = _round_up(B, 8)
        else:
            block_b = min(_round_up(pl.cdiv(B, 2), 128), 1024)
    else:
        block_b = _round_up(block_b, 8)
    # In-kernel M-chunk of 128 rows keeps MXU/VPU/EUP overlapped and bounds
    # live intermediates; make block_b a whole number of chunks.
    m_chunk = block_b if block_b < 128 else 128
    block_b = _round_up(block_b, m_chunk)

    # Ragged last block is handled by Pallas: reads padded, OOB stores masked.
    grid = (pl.cdiv(B, block_b),)

    nbytes = lambda a: a.size * a.dtype.itemsize
    cost = pl.CostEstimate(
        flops=2 * B * (latent_dim * h1 + h1 * h2 + h2 * out_dim),
        transcendentals=B * (h1 + h2),
        bytes_accessed=(nbytes(z)
                        + sum(nbytes(a) for a in (w1, b1, w2, b2, w3, b3))
                        + B * out_dim * z.dtype.itemsize),
    )

    out = pl.pallas_call(
        functools.partial(_dynamics_kernel, m_chunk=m_chunk,
                          approximate_gelu=approximate_gelu),
        out_shape=jax.ShapeDtypeStruct((B, out_dim), z.dtype),
        grid_spec=pltpu.PrefetchScalarGridSpec(
            num_scalar_prefetch=0,
            grid=grid,
            in_specs=[
                pl.BlockSpec((block_b, latent_dim), lambda i: (i, 0)),  # z
                pl.BlockSpec((latent_dim, h1), lambda i: (0, 0)),       # w1
                pl.BlockSpec((1, h1), lambda i: (0, 0)),                # b1
                pl.BlockSpec((h1, h2), lambda i: (0, 0)),               # w2
                pl.BlockSpec((1, h2), lambda i: (0, 0)),                # b2
                pl.BlockSpec((h2, out_dim), lambda i: (0, 0)),          # w3
                pl.BlockSpec((1, out_dim), lambda i: (0, 0)),           # b3
            ],
            out_specs=pl.BlockSpec((block_b, out_dim), lambda i: (i, 0)),
        ),
        compiler_params=pltpu.CompilerParams(
            dimension_semantics=("parallel",),
        ),
        cost_estimate=cost,
    )(z, w1, b1, w2, b2, w3, b3)

    return out


def init_params(key, latent_dim, hidden_dims):
    """Deterministic synthetic parameters (shapes match nn.Linear layers)."""
    dims = [latent_dim] + list(hidden_dims) + [latent_dim]
    params = []
    for idx in range(len(dims) - 1):
        d_in, d_out = dims[idx], dims[idx + 1]
        key, wk, bk = jax.random.split(key, 3)
        bound = 1.0 / jnp.sqrt(d_in)
        w = jax.random.uniform(wk, (d_in, d_out), jnp.float32, -bound, bound)
        b = jax.random.uniform(bk, (1, d_out), jnp.float32, -bound, bound)
        params += [w, b]
    return tuple(params)


def _reference_forward(z, params):
    w1, b1, w2, b2, w3, b3 = params
    h = jax.nn.gelu(z @ w1 + b1, approximate=False)
    h = jax.nn.gelu(h @ w2 + b2, approximate=False)
    return h @ w3 + b3


if __name__ == "__main__":
    latent_dim = 32
    hidden_dims = [128, 128]

    key = jax.random.PRNGKey(0)
    kz, kp = jax.random.split(key)
    raw_params = init_params(kp, latent_dim, hidden_dims)
    t = jnp.float32(0.0)  # unused, mirrors the PyTorch signature

    # Exact mode (f32 weights + erf GELU): must match the PyTorch-style reference.
    exact_params = prepare_params(raw_params, weight_dtype=None)
    z_small = jax.random.normal(kz, (8, latent_dim), jnp.float32)
    ref_small = _reference_forward(z_small, raw_params)
    out_small = jax.block_until_ready(
        dynamics_forward(t, z_small, exact_params, approximate_gelu=False))
    assert out_small.shape == (8, latent_dim)
    assert jnp.allclose(out_small, ref_small, atol=1e-4, rtol=1e-4), \
        "exact-path mismatch"

    # Default fast path (bf16 MXU inputs + tanh GELU), ragged multi-step grid.
    fast_params = prepare_params(raw_params)  # one-time prep before the solve
    z_big = jax.random.normal(kz, (1000, latent_dim), jnp.float32)
    ref_big = _reference_forward(z_big, raw_params)
    out_big = jax.block_until_ready(dynamics_forward(t, z_big, fast_params))
    assert out_big.shape == (1000, latent_dim)
    assert bool(jnp.all(jnp.isfinite(out_big)))
    assert jnp.allclose(out_big, ref_big, atol=1e-1, rtol=1e-1), \
        "fast-path drift too large"

    # Fast path on a tiny batch (single grid step, single in-kernel chunk).
    out_fast_small = jax.block_until_ready(
        dynamics_forward(t, z_small, fast_params))
    assert out_fast_small.shape == (8, latent_dim)
    assert jnp.allclose(out_fast_small, ref_small, atol=1e-1, rtol=1e-1), \
        "fast-path small-batch drift too large"

    print("KERNEL_OK")
</pallas_src>

<mosaic_0001>
module attributes {stable_mosaic.version = 11 : i64} {
  func.func @_dynamics_kernel(%arg0: i32, %arg1: memref<8x32xf32, #tpu.memory_space<vmem>>, %arg2: memref<32x128xf32, #tpu.memory_space<vmem>>, %arg3: memref<1x128xf32, #tpu.memory_space<vmem>>, %arg4: memref<128x128xf32, #tpu.memory_space<vmem>>, %arg5: memref<1x128xf32, #tpu.memory_space<vmem>>, %arg6: memref<128x32xf32, #tpu.memory_space<vmem>>, %arg7: memref<1x32xf32, #tpu.memory_space<vmem>>, %arg8: memref<8x32xf32, #tpu.memory_space<vmem>>) attributes {dimension_semantics = [#tpu.dimension_semantics<parallel>], iteration_bounds = array<i64: 1>, scalar_prefetch = 0 : i64, scratch_operands = 0 : i64, tpu.core_type = #tpu.core_type<tc>, window_params = [{transform_indices = @transform_0, window_bounds = array<i64: 8, 32>}, {pipeline_mode = #tpu.pipeline_mode<synchronous>, transform_indices = @transform_1, window_bounds = array<i64: 32, 128>}, {pipeline_mode = #tpu.pipeline_mode<synchronous>, transform_indices = @transform_2, window_bounds = array<i64: 1, 128>}, {pipeline_mode = #tpu.pipeline_mode<synchronous>, transform_indices = @transform_3, window_bounds = array<i64: 128, 128>}, {pipeline_mode = #tpu.pipeline_mode<synchronous>, transform_indices = @transform_4, window_bounds = array<i64: 1, 128>}, {pipeline_mode = #tpu.pipeline_mode<synchronous>, transform_indices = @transform_5, window_bounds = array<i64: 128, 32>}, {pipeline_mode = #tpu.pipeline_mode<synchronous>, transform_indices = @transform_6, window_bounds = array<i64: 1, 32>}, {transform_indices = @transform_7, window_bounds = array<i64: 8, 32>}]} {
    %c0 = arith.constant 0 : index
    %c0_0 = arith.constant 0 : index
    %0 = vector.load %arg2[%c0, %c0_0] : memref<32x128xf32, #tpu.memory_space<vmem>>, vector<32x128xf32>
    %c0_1 = arith.constant 0 : index
    %c0_2 = arith.constant 0 : index
    %1 = vector.load %arg4[%c0_1, %c0_2] : memref<128x128xf32, #tpu.memory_space<vmem>>, vector<128x128xf32>
    %c0_3 = arith.constant 0 : index
    %c0_4 = arith.constant 0 : index
    %2 = vector.load %arg6[%c0_3, %c0_4] : memref<128x32xf32, #tpu.memory_space<vmem>>, vector<128x32xf32>
    %c0_5 = arith.constant 0 : index
    %c0_6 = arith.constant 0 : index
    %3 = vector.load %arg3[%c0_5, %c0_6] : memref<1x128xf32, #tpu.memory_space<vmem>>, vector<1x128xf32>
    %c0_7 = arith.constant 0 : index
    %c0_8 = arith.constant 0 : index
    %4 = vector.load %arg5[%c0_7, %c0_8] : memref<1x128xf32, #tpu.memory_space<vmem>>, vector<1x128xf32>
    %c0_9 = arith.constant 0 : index
    %c0_10 = arith.constant 0 : index
    %5 = vector.load %arg7[%c0_9, %c0_10] : memref<1x32xf32, #tpu.memory_space<vmem>>, vector<1x32xf32>
    %c0_i32 = arith.constant 0 : i32
    %6 = tpu.assume_multiple %c0_i32, 8 : i32
    %7 = arith.index_cast %6 : i32 to index
    %c0_11 = arith.constant 0 : index
    %8 = vector.load %arg1[%7, %c0_11] : memref<8x32xf32, #tpu.memory_space<vmem>>, vector<8x32xf32>
    %cst = arith.constant dense<0.000000e+00> : vector<8x128xf32>
    %9 = tpu.matmul %8, %0, %cst {dimension_numbers = #tpu.dot_dimension_numbers<[1], [0], [0], [1], [0, 0, 1, 1], [], []>} : vector<8x32xf32>, vector<32x128xf32>, vector<8x128xf32> -> vector<8x128xf32>
    %10 = vector.broadcast %3 : vector<1x128xf32> to vector<8x128xf32>
    %11 = arith.addf %9, %10 : vector<8x128xf32>
    %cst_12 = arith.constant 5.000000e-01 : f32
    %12 = vector.broadcast %cst_12 : f32 to vector<8x128xf32>
    %13 = arith.mulf %12, %11 : vector<8x128xf32>
    %cst_13 = arith.constant 0.707106769 : f32
    %14 = vector.broadcast %cst_13 : f32 to vector<8x128xf32>
    %15 = arith.mulf %11, %14 : vector<8x128xf32>
    %16 = math.erf %15 : vector<8x128xf32>
    %cst_14 = arith.constant 1.000000e+00 : f32
    %17 = vector.broadcast %cst_14 : f32 to vector<8x128xf32>
    %18 = arith.addf %17, %16 : vector<8x128xf32>
    %19 = arith.mulf %13, %18 : vector<8x128xf32>
    %cst_15 = arith.constant dense<0.000000e+00> : vector<8x128xf32>
    %20 = tpu.matmul %19, %1, %cst_15 {dimension_numbers = #tpu.dot_dimension_numbers<[1], [0], [0], [1], [0, 0, 1, 1], [], []>} : vector<8x128xf32>, vector<128x128xf32>, vector<8x128xf32> -> vector<8x128xf32>
    %21 = vector.broadcast %4 : vector<1x128xf32> to vector<8x128xf32>
    %22 = arith.addf %20, %21 : vector<8x128xf32>
    %cst_16 = arith.constant 5.000000e-01 : f32
    %23 = vector.broadcast %cst_16 : f32 to vector<8x128xf32>
    %24 = arith.mulf %23, %22 : vector<8x128xf32>
    %cst_17 = arith.constant 0.707106769 : f32
    %25 = vector.broadcast %cst_17 : f32 to vector<8x128xf32>
    %26 = arith.mulf %22, %25 : vector<8x128xf32>
    %27 = math.erf %26 : vector<8x128xf32>
    %cst_18 = arith.constant 1.000000e+00 : f32
    %28 = vector.broadcast %cst_18 : f32 to vector<8x128xf32>
    %29 = arith.addf %28, %27 : vector<8x128xf32>
    %30 = arith.mulf %24, %29 : vector<8x128xf32>
    %cst_19 = arith.constant dense<0.000000e+00> : vector<8x32xf32>
    %31 = tpu.matmul %30, %2, %cst_19 {dimension_numbers = #tpu.dot_dimension_numbers<[1], [0], [0], [1], [0, 0, 1, 1], [], []>} : vector<8x128xf32>, vector<128x32xf32>, vector<8x32xf32> -> vector<8x32xf32>
    %32 = vector.broadcast %5 : vector<1x32xf32> to vector<8x32xf32>
    %33 = arith.addf %31, %32 : vector<8x32xf32>
    %34 = arith.index_cast %6 : i32 to index
    %c0_20 = arith.constant 0 : index
    %35 = vector.load %arg8[%34, %c0_20] : memref<8x32xf32, #tpu.memory_space<vmem>>, vector<8x32xf32>
    tpu.vector_store %arg8[%34, %c0_20], %33 {strides = array<i32>} : memref<8x32xf32, #tpu.memory_space<vmem>>, vector<8x32xf32>,
    return
  }
  func.func @transform_0(%arg0: i32) -> (i32, i32) {
    %c0_i32 = arith.constant 0 : i32
    %c0_i32_0 = arith.constant 0 : i32
    return %arg0, %c0_i32 : i32, i32
  }
  func.func @transform_1(%arg0: i32) -> (i32, i32) {
    %c0_i32 = arith.constant 0 : i32
    %c0_i32_0 = arith.constant 0 : i32
    %c0_i32_1 = arith.constant 0 : i32
    return %c0_i32, %c0_i32_0 : i32, i32
  }
  func.func @transform_2(%arg0: i32) -> (i32, i32) {
    %c0_i32 = arith.constant 0 : i32
    %c0_i32_0 = arith.constant 0 : i32
    %c0_i32_1 = arith.constant 0 : i32
    return %c0_i32, %c0_i32_0 : i32, i32
  }
  func.func @transform_3(%arg0: i32) -> (i32, i32) {
    %c0_i32 = arith.constant 0 : i32
    %c0_i32_0 = arith.constant 0 : i32
    %c0_i32_1 = arith.constant 0 : i32
    return %c0_i32, %c0_i32_0 : i32, i32
  }
  func.func @transform_4(%arg0: i32) -> (i32, i32) {
    %c0_i32 = arith.constant 0 : i32
    %c0_i32_0 = arith.constant 0 : i32
    %c0_i32_1 = arith.constant 0 : i32
    return %c0_i32, %c0_i32_0 : i32, i32
  }
  func.func @transform_5(%arg0: i32) -> (i32, i32) {
    %c0_i32 = arith.constant 0 : i32
    %c0_i32_0 = arith.constant 0 : i32
    %c0_i32_1 = arith.constant 0 : i32
    return %c0_i32, %c0_i32_0 : i32, i32
  }
  func.func @transform_6(%arg0: i32) -> (i32, i32) {
    %c0_i32 = arith.constant 0 : i32
    %c0_i32_0 = arith.constant 0 : i32
    %c0_i32_1 = arith.constant 0 : i32
    return %c0_i32, %c0_i32_0 : i32, i32
  }
  func.func @transform_7(%arg0: i32) -> (i32, i32) {
    %c0_i32 = arith.constant 0 : i32
    %c0_i32_0 = arith.constant 0 : i32
    return %arg0, %c0_i32 : i32, i32
  }
}

</mosaic_0001>

<bundles_post_ra>
// kernel: tpu_custom_call.1
= control target key start
LH: loop header
LB: loop body
LE: loop exit
PB: predicated region body
PF: predicated region fallthrough
CT: control target
= control target key end

     0   :  { %v534_v3 = vmov 0.0|0.0   ;;  %vm535_vm0 = vmmov 0   ;;  %v536_v6 = vmov 0.0   ;;  %s733_s0 = inlined_call_operand.vmem [shape: f32[8,32], index: 0, kind: input, shape index: {}]   ;;  %s734_s1 = inlined_call_operand.vmem [shape: f32[32,128], index: 1, kind: input, shape index: {}]   ;;  %s735_s2 = inlined_call_operand.vmem [shape: f32[1,128], index: 2, kind: input, shape index: {}]   ;;  %s736_s3 = inlined_call_operand.vmem [shape: f32[128,128], index: 3, kind: input, shape index: {}]   ;;  %s737_s4 = inlined_call_operand.vmem [shape: f32[1,128], index: 4, kind: input, shape index: {}]   ;;  %s738_s5 = inlined_call_operand.vmem [shape: f32[128,32], index: 5, kind: input, shape index: {}]   ;;  %s739_s6 = inlined_call_operand.vmem [shape: f32[1,32], index: 6, kind: input, shape index: {}]   ;;  %s740_s7 = inlined_call_operand.hbm [shape: f32[8,32], index: 7, kind: output, shape index: {}]  }
   0x1   :  { %v27_v0 = vld [vmem:[%s734_s1] sm:$0xff]  ;;  %v28_v1 = vld [vmem:[%s734_s1 + $0x8] sm:$0xff]  ;;  %v29_v2 = vld [vmem:[%s734_s1 + $0x10] sm:$0xff]  ;;  %448 = vmatprep.subr.bf16.mxu0 %v534_v3  ;;  %375 = vmatprep.mubr.msk.f32.mxu0 %vm535_vm0, %v536_v6 }
   0x2   :  { %v449_v4 = vpack.c.bf16 %v28_v1, %v27_v0  ;;  %v30_v5 = vld [vmem:[%s734_s1 + $0x18] sm:$0xff]  ;;  %v31_v7 = vld [vmem:[%s736_s3] sm:$0xff]  ;;  %454 = vmatprep.subr.bf16.mxu1 %v534_v3  ;;  %v32_v8 = vld [vmem:[%s736_s3 + $0x8] sm:$0xff]  ;;  %410 = vmatprep.mubr.msk.f32.mxu1 %vm535_vm0, %v536_v6 }
   0x3   :  { %v33_v9 = vld [vmem:[%s736_s3 + $0x10] sm:$0xff]  ;;  %v34_v10 = vld [vmem:[%s736_s3 + $0x18] sm:$0xff]  ;;  %v452_v11 = vpack.c.bf16 %v30_v5, %v29_v2  ;;  %v455_v12 = vpack.c.bf16 %v32_v8, %v31_v7 }
   0x4   :  { %450 = vmatpush3.bf16.msra.mxu0 %v449_v4 }
   0x5   :  { %451 = vmatprep.subr.bf16.mxu0 %v534_v3 }
   0x6   :  { %12 = vsyncpa [#allocation3], 0  ;;  %456 = vmatpush3.bf16.msra.mxu1 %v455_v12  ;;  %v458_v13 = vpack.c.bf16 %v34_v10, %v33_v9  ;;  %v35_v14 = vld [vmem:[%s736_s3 + $0x20] sm:$0xff]  ;;  %v36_v15 = vld [vmem:[%s736_s3 + $0x28] sm:$0xff]  ;;  %vm73_vm1 = vcmask 261120  }
   0x7   :  { %457 = vmatprep.subr.bf16.mxu1 %v534_v3  ;;  %v66_v16 = vld [vmem:[%s733_s0] sm:$0xff]  ;;  %v461_v17 = vpack.c.bf16 %v36_v15, %v35_v14  ;;  %v37_v18 = vld [vmem:[%s736_s3 + $0x30] sm:$0xff]  ;;  %v38_v19 = vld [vmem:[%s736_s3 + $0x38] sm:$0xff] }
   0x8   :  { %453 = vmatpush3.bf16.msra.mxu0 %v452_v11  ;;  %v464_v20 = vpack.c.bf16 %v38_v19, %v37_v18  ;;  %v39_v21 = vld [vmem:[%s736_s3 + $0x40] sm:$0xff]  ;;  %v40_v22 = vld [vmem:[%s736_s3 + $0x48] sm:$0xff]  ;;  %v41_v24 = vld [vmem:[%s736_s3 + $0x50] sm:$0xff] }
   0x9   :  { %478 = vmatprep.subr.bf16.mxu0 %v534_v3  ;;  %v467_v23 = vpack.c.bf16 %v40_v22, %v39_v21  ;;  %v42_v25 = vld [vmem:[%s736_s3 + $0x58] sm:$0xff]  ;;  %v43_v27 = vld [vmem:[%s736_s3 + $0x60] sm:$0xff]  ;;  %v44_v28 = vld [vmem:[%s736_s3 + $0x68] sm:$0xff] }
   0xa   :  { %459 = vmatpush3.bf16.msra.mxu1 %v458_v13  ;;  %v470_v26 = vpack.c.bf16 %v42_v25, %v41_v24  ;;  %v473_v29 = vpack.c.bf16 %v44_v28, %v43_v27  ;;  %v45_v30 = vld [vmem:[%s736_s3 + $0x70] sm:$0xff]  ;;  %v46_v31 = vld [vmem:[%s736_s3 + $0x78] sm:$0xff]  ;;  %v47_v33 = vld [vmem:[%s738_s5] sm:$0xff] }
   0xb   :  { %376 = vmatmul.mubr.msk.f32.vlgmr.msra.gmra.mrb[0].mxu0 %vm73_vm1, %v66_v16  ;;  %460 = vmatprep.subr.bf16.mxu1 %v534_v3  ;;  %v476_v32 = vpack.c.bf16 %v46_v31, %v45_v30  ;;  %v48_v34 = vld [vmem:[%s738_s5 + $0x8] sm:$0xff]  ;;  %v49_v35 = vld [vmem:[%s738_s5 + $0x10] sm:$0xff]  ;;  %v50_v37 = vld [vmem:[%s738_s5 + $0x18] sm:$0xff] }
   0xc   :  { %445 = vmatprep.mubr.msk.f32.mxu0 %vm535_vm0, %v536_v6  ;;  %v479_v36 = vpack.c.bf16 %v48_v34, %v47_v33  ;;  %v482_v38 = vpack.c.bf16 %v50_v37, %v49_v35  ;;  %v51_v39 = vld [vmem:[%s738_s5 + $0x20] sm:$0xff]  ;;  %v52_v40 = vld [vmem:[%s738_s5 + $0x28] sm:$0xff]  ;;  %v53_v51 = vld [vmem:[%s738_s5 + $0x30] sm:$0xff] }
   0xd   :  { %v485_v41 = vpack.c.bf16 %v52_v40, %v51_v39  ;;  %v324_v42 = vld [vmem:[%s735_s2] ss:$0 sm:$0xff]  ;;  %v54_v52 = vld [vmem:[%s738_s5 + $0x38] sm:$0xff]  ;;  %v56_v55 = vld [vmem:[%s738_s5 + $0x48] sm:$0xff] }
   0xe   :  { %462 = vmatpush3.bf16.msra.mxu1 %v461_v17  ;;  %480 = vmatpush3.bf16.msra.mxu0 %v479_v36  ;;  %v488_v53 = vpack.c.bf16 %v54_v52, %v53_v51  ;;  %v55_v54 = vld [vmem:[%s738_s5 + $0x40] sm:$0xff]  ;;  %v57_v57 = vld [vmem:[%s738_s5 + $0x50] sm:$0xff]  ;;  %v58_v58 = vld [vmem:[%s738_s5 + $0x58] sm:$0xff] }
   0xf   :  { %463 = vmatprep.subr.bf16.mxu1 %v534_v3  ;;  %481 = vmatprep.subr.bf16.mxu0 %v534_v3  ;;  %v491_v56 = vpack.c.bf16 %v56_v55, %v55_v54  ;;  %v494_v59 = vpack.c.bf16 %v58_v58, %v57_v57  ;;  %v59_v60 = vld [vmem:[%s738_s5 + $0x60] sm:$0xff]  ;;  %v60_v61 = vld [vmem:[%s738_s5 + $0x68] sm:$0xff]  ;;  %v61_v63 = vld [vmem:[%s738_s5 + $0x70] sm:$0xff] }
  0x10   :  { %v497_v62 = vpack.c.bf16 %v60_v61, %v59_v60  ;;  %v62_v0 = vld [vmem:[%s738_s5 + $0x78] sm:$0xff]  ;;  %v326_v2 = vld [vmem:[%s737_s4] ss:$0 sm:$0xff]  ;;  %s537_s5 = smov [#allocation2]  }
  0x11   :  { %v500_v1 = vpack.c.bf16 %v62_v0, %v61_v63  ;;  %v327_v11 = vld [vmem:[%s739_s6] ss:$0 sm:$0xff]  ;;  %s316_s26 = sshll.u32 %s537_s5, 4  ;;  %s317_s26 = int_to_ptr.vmem [resolvable:$true] %s316_s26 }
  0x12   :  { %465 = vmatpush3.bf16.msra.mxu1 %v464_v20  ;;  %483 = vmatpush3.bf16.msra.mxu0 %v482_v38  ;;  %s510_s4 = scalar_lea.vmem %s317_s26, 128  ;;  %p515_p1 = scmp.lt.s32.totalorder %s317_s26, %s317_s26 }
  0x13   :  { %466 = vmatprep.subr.bf16.mxu1 %v534_v3  ;;  %484 = vmatprep.subr.bf16.mxu0 %v534_v3  ;;  %p511_p0 = scmp.ne.s32.totalorder %s317_s26, %s510_s4  ;;  %p516_p2 = scmp.lt.s32.totalorder %s510_s4, %s510_s4 }
  0x15   :  { %p517_p3 = por %p516_p2, %p515_p1 }
  0x16   :  { %468 = vmatpush3.bf16.msra.mxu1 %v467_v23  ;;  %486 = vmatpush3.bf16.msra.mxu0 %v485_v41 }
  0x17   :  { %469 = vmatprep.subr.bf16.mxu1 %v534_v3  ;;  %487 = vmatprep.subr.bf16.mxu0 %v534_v3  ;;  %p518_p4 = pnand %p517_p3, %p511_p0 }
  0x1a   :  { %471 = vmatpush3.bf16.msra.mxu1 %v470_v26  ;;  %489 = vmatpush3.bf16.msra.mxu0 %v488_v53 }
  0x1b   :  { %472 = vmatprep.subr.bf16.mxu1 %v534_v3  ;;  %490 = vmatprep.subr.bf16.mxu0 %v534_v3 }
  0x1e   :  { %474 = vmatpush3.bf16.msra.mxu1 %v473_v29  ;;  %492 = vmatpush3.bf16.msra.mxu0 %v491_v56 }
  0x1f   :  { %475 = vmatprep.subr.bf16.mxu1 %v534_v3  ;;  %493 = vmatprep.subr.bf16.mxu0 %v534_v3 }
  0x22   :  { %477 = vmatpush3.bf16.msra.mxu1 %v476_v32  ;;  %495 = vmatpush3.bf16.msra.mxu0 %v494_v59 }
  0x23   :  { %496 = vmatprep.subr.bf16.mxu0 %v534_v3 }
  0x26   :  { %498 = vmatpush3.bf16.msra.mxu0 %v497_v62 }
  0x27   :  { %499 = vmatprep.subr.bf16.mxu0 %v534_v3 }
  0x2a   :  { %501 = vmatpush3.bf16.msra.mxu0 %v500_v1 }
  0xde   :  { %v143_v43 = vpop.f32.mrb[0].mxu0 }
  0xdf   :  { %v144_v44 = vadd.f32 %v324_v42, %v143_v43  ;;  %v377_v45 = vpop.f32.mrb[1].mxu0 }
  0xe1   :  { %v148_v46 = vmul.f32 0.70710677, %v144_v44  ;;  %v147_v48 = vmul.f32 0.5, %v144_v44 }
  0xe3   :  { %506 = verf.f32 %v148_v46 }
  0xed   :  { %v507_v47 = vpop.eup %506 }
  0xee   :  { %v150_v49 = vadd.f32 1.0, %v507_v47 }
  0xf0   :  { %v151_v50 = vmul.f32 %v150_v49, %v147_v48 }
  0xf2   :  { %411 = vmatmul.mubr.f32.vlgmr.msra.gmra.mrb[0].mxu1 %v151_v50 }
 0x1c5   :  { %v224_v4 = vpop.f32.mrb[0].mxu1 }
 0x1c6   :  { %v225_v5 = vadd.f32 %v326_v2, %v224_v4  ;;  %v412_v6 = vpop.f32.mrb[1].mxu1 }
 0x1c8   :  { %v229_v7 = vmul.f32 0.70710677, %v225_v5  ;;  %v228_v8 = vmul.f32 0.5, %v225_v5 }
 0x1ca   :  { %508 = verf.f32 %v229_v7 }
 0x1d4   :  { %v509_v3 = vpop.eup %508 }
 0x1d5   :  { %v231_v9 = vadd.f32 1.0, %v509_v3 }
 0x1d7   :  { %v232_v10 = vmul.f32 %v231_v9, %v228_v8 }
 0x1d9   :  { %446 = vmatmul.mubr.f32.vlgmr.msra.gmra.mrb[2].mxu0 %v232_v10 }
 0x2ac   :  { %v305_v12 = vpop.f32.mrb[2].mxu0 }
 0x2ad   :  { %v306_v13 = vadd.f32 %v327_v11, %v305_v12  ;;  %v447_v14 = vpop.f32.mrb[3].mxu0 }
 0x2af   :  { %309 = vst.msk [vmem:[#allocation2] sm:$0xff] %vm73_vm1, %v306_v13 }
 0x2b0   :  { %521 = shalt.err (!%p518_p4)
}
 0x2b1   :  { %s522_s29 = scalar_lea.hbm %s740_s7, 128 }
 0x2b2   :  { %p523_p5 = scmp.ne.s32.totalorder %s740_s7, %s522_s29  ;;  %p526_p6 = scmp.lt.u32.totalorder %s522_s29, %s740_s7 }
 0x2b4   :  { %p528_p7 = pnand %p526_p6, %p523_p5 }
 0x2b6   :  { %531 = shalt.err (!%p528_p7)
}
 0x2b7   :  { %319 = dma.vmem_to_hbm [thread:$0]  %s317_s26, 128, %s740_s7, [#allocation3]  }
 0x2b8   :  { %532 = dma.done.wait [#allocation3], 128  }
 0x2b9   :  { %533 = vsyncadd [#allocation3], 4294967168 }
 0x2ba   :  { %323 = vsyncpa [#allocation3], 1 }

</bundles_post_ra>
